<compile_context>
chip_gen: v5e
topology: v5e:2x2
jax: 0.10.0
libtpu: 0.0.40
codegen_flags: <defaults>
</compile_context>

<pallas_src>
import jax
import jax.numpy as jnp
from jax.experimental import pallas as pl
from jax.experimental.pallas import tpu as pltpu


def expert_kernel(x_ref, w1_ref, b1_ref, w2_ref, b2_ref, o_ref, acc_ref):
    # x_ref:   (tile_n, input_dim)
    # w1_ref:  (input_dim, tile_h)     b1_ref: (1, tile_h)     (f32)
    # w2_ref:  (tile_h, input_dim)     b2_ref: (1, input_dim)  (f32)
    # o_ref:   (tile_n, input_dim)
    # acc_ref: (tile_n, input_dim) f32 scratch, resident across the kh axis.
    kh = pl.program_id(1)

    @pl.when(kh == 0)
    def _():
        acc_ref[...] = jnp.zeros_like(acc_ref)

    # First linear (one hidden slab) + LeakyReLU(0.01); epilogue in f32.
    h = jnp.dot(x_ref[...], w1_ref[...], preferred_element_type=jnp.float32)
    h = h + b1_ref[...].astype(jnp.float32)
    h = jnp.maximum(h, 0.01 * h)

    # Dropout(p=0.15) is identity in eval mode.

    # Second linear: accumulate this hidden slab's contribution (f32 accum).
    acc_ref[...] += jnp.dot(
        h.astype(w2_ref.dtype), w2_ref[...], preferred_element_type=jnp.float32
    )

    @pl.when(kh == pl.num_programs(1) - 1)
    def _():
        o_ref[...] = (acc_ref[...] + b2_ref[...].astype(jnp.float32)).astype(o_ref.dtype)


def expert_forward(x, w1, b1, w2, b2, *, tile_n=None, tile_h=None):
    n, input_dim = x.shape
    hidden_dim = w1.shape[1]
    assert w1.shape == (input_dim, hidden_dim)
    assert w2.shape == (hidden_dim, input_dim)
    assert b1.shape == (1, hidden_dim) and b2.shape == (1, input_dim)

    if tile_n is None:
        tile_n = min(n, 256)
    if tile_h is None:
        tile_h = min(hidden_dim, 512)

    assert n % tile_n == 0, "tile_n must divide batch"
    assert hidden_dim % tile_h == 0, "tile_h must divide hidden_dim"
    assert tile_n == n or tile_n % 8 == 0, "tile_n must be a multiple of 8"
    assert tile_h == hidden_dim or tile_h % 128 == 0, "tile_h must be a multiple of 128"

    grid = (n // tile_n, hidden_dim // tile_h)  # (parallel batch, arbitrary reduction)

    xb = jnp.dtype(x.dtype).itemsize
    wb = jnp.dtype(w1.dtype).itemsize
    # Rough VMEM footprint (double-buffered inputs/outputs + f32 accumulator).
    vmem_est = (
        2 * tile_n * input_dim * xb        # x tile
        + 2 * input_dim * tile_h * wb      # w1 slab
        + 2 * tile_h * 4                   # b1 slab (f32)
        + 2 * tile_h * input_dim * wb      # w2 slab
        + 2 * input_dim * 4                # b2 (f32)
        + 2 * tile_n * input_dim * xb      # out tile
        + tile_n * input_dim * 4           # accumulator
    )
    # Give headroom, never below the v6e/v7x 32 MiB scoped default, and stay
    # under v7x's 64 MiB physical VMEM.
    vmem_limit = int(min(max(2 * vmem_est + (4 << 20), 32 << 20), 64 << 20))

    flops = 4 * n * input_dim * hidden_dim  # two matmuls
    bytes_accessed = (
        2 * n * input_dim * xb              # x in + out
        + 2 * input_dim * hidden_dim * wb   # w1 + w2
        + 4 * (hidden_dim + input_dim)      # biases
    )

    return pl.pallas_call(
        expert_kernel,
        out_shape=jax.ShapeDtypeStruct((n, input_dim), x.dtype),
        grid_spec=pltpu.PrefetchScalarGridSpec(
            num_scalar_prefetch=0,
            grid=grid,
            in_specs=[
                # activations: tiled over batch, full feature width (lane-dense)
                pl.BlockSpec((tile_n, input_dim), lambda i, kh: (i, 0)),
                # W1 slab: full input_dim x tile_h hidden slice
                pl.BlockSpec((input_dim, tile_h), lambda i, kh: (0, kh)),
                # b1 slab
                pl.BlockSpec((1, tile_h), lambda i, kh: (0, kh)),
                # W2 slab: tile_h hidden slice x full input_dim
                pl.BlockSpec((tile_h, input_dim), lambda i, kh: (kh, 0)),
                # b2: full, constant block across the grid
                pl.BlockSpec((1, input_dim), lambda i, kh: (0, 0)),
            ],
            out_specs=pl.BlockSpec((tile_n, input_dim), lambda i, kh: (i, 0)),
            scratch_shapes=[pltpu.VMEM((tile_n, input_dim), jnp.float32)],
        ),
        compiler_params=pltpu.CompilerParams(
            dimension_semantics=("parallel", "arbitrary"),
            vmem_limit_bytes=vmem_limit,
        ),
        cost_estimate=pl.CostEstimate(
            flops=flops, transcendentals=0, bytes_accessed=bytes_accessed
        ),
    )(x, w1, b1, w2, b2)


def init_expert_params(key, input_dim, hidden_dim, dtype=jnp.float32):
    """Deterministic init mimicking nn.Linear's uniform(-1/sqrt(fan_in), 1/sqrt(fan_in))."""
    k1, k2, k3, k4 = jax.random.split(key, 4)
    bound1 = 1.0 / jnp.sqrt(jnp.float32(input_dim))
    bound2 = 1.0 / jnp.sqrt(jnp.float32(hidden_dim))
    # stored transposed vs PyTorch: (in, out) so the kernel computes x @ W + b
    w1 = jax.random.uniform(k1, (input_dim, hidden_dim), dtype, -bound1, bound1)
    b1 = jax.random.uniform(k2, (1, hidden_dim), dtype, -bound1, bound1)
    w2 = jax.random.uniform(k3, (hidden_dim, input_dim), dtype, -bound2, bound2)
    b2 = jax.random.uniform(k4, (1, input_dim), dtype, -bound2, bound2)
    return w1, b1, w2, b2


def expert_reference(x, w1, b1, w2, b2):
    """Pure-JAX f32 reference (highest precision matmuls)."""
    xf = x.astype(jnp.float32)
    h = jnp.dot(xf, w1.astype(jnp.float32), precision=jax.lax.Precision.HIGHEST)
    h = h + b1.astype(jnp.float32)
    h = jnp.maximum(h, 0.01 * h)
    y = jnp.dot(h, w2.astype(jnp.float32), precision=jax.lax.Precision.HIGHEST)
    return y + b2.astype(jnp.float32)


if __name__ == "__main__":
    key = jax.random.PRNGKey(0)
    kx, kp = jax.random.split(key)

    # Small but lane-dense shapes (feature dims are multiples of 128).
    batch = 256
    input_dim = 128
    hidden_dim = 512

    x = jax.random.normal(kx, (batch, input_dim), jnp.float32)
    w1, b1, w2, b2 = init_expert_params(kp, input_dim, hidden_dim)

    # f32 path: grid = (2, 2) -> batch axis shards across v7x's 2 TCs.
    out = expert_forward(x, w1, b1, w2, b2, tile_n=128, tile_h=256)
    out = jax.block_until_ready(out)
    ref = expert_reference(x, w1, b1, w2, b2)
    assert out.shape == (batch, input_dim)
    assert jnp.allclose(out, ref, atol=5e-3, rtol=5e-3), "f32 mismatch vs reference"

    # bf16 activations/weights + f32 accumulation (the perf configuration).
    x_bf, w1_bf, w2_bf = (a.astype(jnp.bfloat16) for a in (x, w1, w2))
    out_bf = expert_forward(x_bf, w1_bf, b1, w2_bf, b2, tile_n=128, tile_h=256)
    out_bf = jax.block_until_ready(out_bf)
    ref_bf = expert_reference(x_bf, w1_bf, b1, w2_bf, b2)
    assert jnp.allclose(
        out_bf.astype(jnp.float32), ref_bf, atol=6e-2, rtol=6e-2
    ), "bf16 mismatch vs reference"

    print("KERNEL_OK")
</pallas_src>

<mosaic_0001>
module attributes {stable_mosaic.version = 11 : i64} {
  func.func @expert_kernel(%arg0: i32, %arg1: i32, %arg2: memref<128x128xf32, #tpu.memory_space<vmem>>, %arg3: memref<128x256xf32, #tpu.memory_space<vmem>>, %arg4: memref<1x256xf32, #tpu.memory_space<vmem>>, %arg5: memref<256x128xf32, #tpu.memory_space<vmem>>, %arg6: memref<1x128xf32, #tpu.memory_space<vmem>>, %arg7: memref<128x128xf32, #tpu.memory_space<vmem>>, %arg8: memref<128x128xf32, #tpu.memory_space<vmem>>) attributes {dimension_semantics = [#tpu.dimension_semantics<parallel>, #tpu.dimension_semantics<arbitrary>], iteration_bounds = array<i64: 2, 2>, scalar_prefetch = 0 : i64, scratch_operands = 1 : i64, tpu.core_type = #tpu.core_type<tc>, window_params = [{transform_indices = @transform_0, window_bounds = array<i64: 128, 128>}, {transform_indices = @transform_1, window_bounds = array<i64: 128, 256>}, {transform_indices = @transform_2, window_bounds = array<i64: 1, 256>}, {transform_indices = @transform_3, window_bounds = array<i64: 256, 128>}, {pipeline_mode = #tpu.pipeline_mode<synchronous>, transform_indices = @transform_4, window_bounds = array<i64: 1, 128>}, {transform_indices = @transform_5, window_bounds = array<i64: 128, 128>}]} {
    %c0_i32 = arith.constant 0 : i32
    %0 = arith.cmpi eq, %arg1, %c0_i32 : i32
    %1 = arith.extui %0 : i1 to i32
    %c0_i32_0 = arith.constant 0 : i32
    %2 = arith.cmpi ne, %1, %c0_i32_0 : i32
    scf.if %2 {
      %cst_15 = arith.constant 0.000000e+00 : f32
      %20 = vector.broadcast %cst_15 : f32 to vector<128x128xf32>
      %c0_16 = arith.constant 0 : index
      %c0_17 = arith.constant 0 : index
      %21 = vector.load %arg8[%c0_16, %c0_17] : memref<128x128xf32, #tpu.memory_space<vmem>>, vector<128x128xf32>
      tpu.vector_store %arg8[%c0_16, %c0_17], %20 {strides = array<i32>} : memref<128x128xf32, #tpu.memory_space<vmem>>, vector<128x128xf32>,
    } else {
    }
    %c0 = arith.constant 0 : index
    %c0_1 = arith.constant 0 : index
    %3 = vector.load %arg2[%c0, %c0_1] : memref<128x128xf32, #tpu.memory_space<vmem>>, vector<128x128xf32>
    %c0_2 = arith.constant 0 : index
    %c0_3 = arith.constant 0 : index
    %4 = vector.load %arg3[%c0_2, %c0_3] : memref<128x256xf32, #tpu.memory_space<vmem>>, vector<128x256xf32>
    %cst = arith.constant dense<0.000000e+00> : vector<128x256xf32>
    %5 = tpu.matmul %3, %4, %cst {dimension_numbers = #tpu.dot_dimension_numbers<[1], [0], [0], [1], [0, 0, 1, 1], [], []>} : vector<128x128xf32>, vector<128x256xf32>, vector<128x256xf32> -> vector<128x256xf32>
    %c0_4 = arith.constant 0 : index
    %c0_5 = arith.constant 0 : index
    %6 = vector.load %arg4[%c0_4, %c0_5] : memref<1x256xf32, #tpu.memory_space<vmem>>, vector<1x256xf32>
    %7 = vector.broadcast %6 : vector<1x256xf32> to vector<128x256xf32>
    %8 = arith.addf %5, %7 : vector<128x256xf32>
    %cst_6 = arith.constant 0.00999999977 : f32
    %9 = vector.broadcast %cst_6 : f32 to vector<128x256xf32>
    %10 = arith.mulf %9, %8 : vector<128x256xf32>
    %11 = arith.maximumf %8, %10 : vector<128x256xf32>
    %c0_7 = arith.constant 0 : index
    %c0_8 = arith.constant 0 : index
    %12 = vector.load %arg8[%c0_7, %c0_8] : memref<128x128xf32, #tpu.memory_space<vmem>>, vector<128x128xf32>
    %c0_9 = arith.constant 0 : index
    %c0_10 = arith.constant 0 : index
    %13 = vector.load %arg5[%c0_9, %c0_10] : memref<256x128xf32, #tpu.memory_space<vmem>>, vector<256x128xf32>
    %cst_11 = arith.constant dense<0.000000e+00> : vector<128x128xf32>
    %14 = tpu.matmul %11, %13, %cst_11 {dimension_numbers = #tpu.dot_dimension_numbers<[1], [0], [0], [1], [0, 0, 1, 1], [], []>} : vector<128x256xf32>, vector<256x128xf32>, vector<128x128xf32> -> vector<128x128xf32>
    %15 = arith.addf %12, %14 : vector<128x128xf32>
    %c0_12 = arith.constant 0 : index
    %c0_13 = arith.constant 0 : index
    %16 = vector.load %arg8[%c0_12, %c0_13] : memref<128x128xf32, #tpu.memory_space<vmem>>, vector<128x128xf32>
    tpu.vector_store %arg8[%c0_12, %c0_13], %15 {strides = array<i32>} : memref<128x128xf32, #tpu.memory_space<vmem>>, vector<128x128xf32>,
    %c1_i32 = arith.constant 1 : i32
    %17 = arith.cmpi eq, %arg1, %c1_i32 : i32
    %18 = arith.extui %17 : i1 to i32
    %c0_i32_14 = arith.constant 0 : i32
    %19 = arith.cmpi ne, %18, %c0_i32_14 : i32
    scf.if %19 {
      %c0_15 = arith.constant 0 : index
      %c0_16 = arith.constant 0 : index
      %20 = vector.load %arg8[%c0_15, %c0_16] : memref<128x128xf32, #tpu.memory_space<vmem>>, vector<128x128xf32>
      %c0_17 = arith.constant 0 : index
      %c0_18 = arith.constant 0 : index
      %21 = vector.load %arg6[%c0_17, %c0_18] : memref<1x128xf32, #tpu.memory_space<vmem>>, vector<1x128xf32>
      %22 = vector.broadcast %21 : vector<1x128xf32> to vector<128x128xf32>
      %23 = arith.addf %20, %22 : vector<128x128xf32>
      %c0_19 = arith.constant 0 : index
      %c0_20 = arith.constant 0 : index
      %24 = vector.load %arg7[%c0_19, %c0_20] : memref<128x128xf32, #tpu.memory_space<vmem>>, vector<128x128xf32>
      tpu.vector_store %arg7[%c0_19, %c0_20], %23 {strides = array<i32>} : memref<128x128xf32, #tpu.memory_space<vmem>>, vector<128x128xf32>,
    } else {
    }
    return
  }
  func.func @transform_0(%arg0: i32, %arg1: i32) -> (i32, i32) {
    %c0_i32 = arith.constant 0 : i32
    %c0_i32_0 = arith.constant 0 : i32
    return %arg0, %c0_i32 : i32, i32
  }
  func.func @transform_1(%arg0: i32, %arg1: i32) -> (i32, i32) {
    %c0_i32 = arith.constant 0 : i32
    %c0_i32_0 = arith.constant 0 : i32
    return %c0_i32, %arg1 : i32, i32
  }
  func.func @transform_2(%arg0: i32, %arg1: i32) -> (i32, i32) {
    %c0_i32 = arith.constant 0 : i32
    %c0_i32_0 = arith.constant 0 : i32
    return %c0_i32, %arg1 : i32, i32
  }
  func.func @transform_3(%arg0: i32, %arg1: i32) -> (i32, i32) {
    %c0_i32 = arith.constant 0 : i32
    %c0_i32_0 = arith.constant 0 : i32
    return %arg1, %c0_i32 : i32, i32
  }
  func.func @transform_4(%arg0: i32, %arg1: i32) -> (i32, i32) {
    %c0_i32 = arith.constant 0 : i32
    %c0_i32_0 = arith.constant 0 : i32
    %c0_i32_1 = arith.constant 0 : i32
    return %c0_i32, %c0_i32_0 : i32, i32
  }
  func.func @transform_5(%arg0: i32, %arg1: i32) -> (i32, i32) {
    %c0_i32 = arith.constant 0 : i32
    %c0_i32_0 = arith.constant 0 : i32
    return %arg0, %c0_i32 : i32, i32
  }
}

</mosaic_0001>

<bundles_post_ra>
// kernel: tpu_custom_call.1
= control target key start
LH: loop header
LB: loop body
LE: loop exit
PB: predicated region body
PF: predicated region fallthrough
CT: control target
= control target key end

     0   :  { %s1937_s0 = inlined_call_operand.hbm [shape: f32[256,128], index: 0, kind: input, shape index: {}]   ;;  %s1938_s1 = inlined_call_operand.hbm [shape: f32[128,512], index: 1, kind: input, shape index: {}]   ;;  %s1939_s2 = inlined_call_operand.hbm [shape: f32[1,512], index: 2, kind: input, shape index: {}]   ;;  %s1940_s3 = inlined_call_operand.hbm [shape: f32[512,128], index: 3, kind: input, shape index: {}]   ;;  %s1941_s4 = inlined_call_operand.vmem [shape: f32[1,128], index: 4, kind: input, shape index: {}]   ;;  %s1942_s5 = inlined_call_operand.hbm [shape: f32[256,128], index: 5, kind: output, shape index: {}]  }
   0x1   :  { %1957 = sst [smem:[#allocation28_spill]] %s1937_s0 }
   0x2   :  { %1958 = sst [smem:[#allocation29_spill]] %s1938_s1 }
   0x3   :  { %1959 = sst [smem:[#allocation30_spill]] %s1941_s4 }
   0x4   :  { %1960 = sst [smem:[#allocation31_spill]] %s1942_s5 }
   0x5   :  { %10 = vsyncpa [#allocation4], 0 }
   0x6   :  { %12 = vsyncpa [#allocation4 + $0x1], 0 }
   0x7   :  { %13 = vsyncpa [#allocation7], 0 }
   0x8   :  { %15 = vsyncpa [#allocation7 + $0x1], 0 }
   0x9   :  { %16 = vsyncpa [#allocation10], 0 }
   0xa   :  { %18 = vsyncpa [#allocation10 + $0x1], 0 }
   0xb   :  { %19 = vsyncpa [#allocation5], 0 }
   0xc   :  { %21 = vsyncpa [#allocation5 + $0x1], 0  ;;  %s1530_s18 = smov 0   ;;  %s1532_s19 = smov 0  }
   0xd   :  { %s1534_s20 = smov 0   ;;  %s1536_s21 = smov 0  }
   0xe   :  { %s1538_s22 = smov 0   ;;  %s1540_s23 = smov 0  }
   0xf   :  { %s1542_s24 = smov 0   ;;  %s1544_s25 = smov 0  }
  0x10   :  { %s1546_s26 = smov 0   ;;  %s1548_s27 = smov 0  }
  0x11   :  { %s1550_s28 = smov 0  }
  0x12 LB: > { %1961 = sst [smem:[#allocation16_spill]] %s1458_s20  ;;  %p54_p0 = scmp.eq.s32.totalorder %s1490_s28, 0  ;;  %s1490_s28 = sphi %s1550_s28, %s27_s28   ;;  %s1486_s27 = sphi %s1548_s27, %s1997_s27   ;;  %s1482_s26 = sphi %s1546_s26, %s2003_s26   ;;  %s1478_s25 = sphi %s1544_s25, %s1995_s25   ;;  %s1474_s24 = sphi %s1542_s24, %s2002_s24   ;;  %s1470_s23 = sphi %s1540_s23, %s1994_s23   ;;  %s1466_s22 = sphi %s1538_s22, %s2001_s22   ;;  %s1462_s21 = sphi %s1536_s21, %s2000_s21   ;;  %s1458_s20 = sphi %s1534_s20, %s1992_s20   ;;  %s1454_s19 = sphi %s1532_s19, %s1999_s19   ;;  %s1450_s18 = sphi %s1530_s18, %s1998_s18  }
  0x13   : > { %1962 = sst [smem:[#allocation17_spill]] %s1462_s21  ;;  %s72_s29 = sadd.s32 1, %s1458_s20 }
  0x14   : > { %1963 = sst [smem:[#allocation18_spill]] %s1470_s23  ;;  %p79_p1 = scmp.ne.s32.totalorder %s1458_s20, %s1454_s19 }
  0x15   : > { %1964 = sst [smem:[#allocation19_spill]] %s1478_s25  ;;  %p85_p2 = scmp.ne.s32.totalorder %s1454_s19, %s1450_s18 }
  0x16   : > { %1965 = sst [smem:[#allocation20_spill]] %s1486_s27  ;;  %p1945_p3 = scmp.lt.s32.totalorder %s1490_s28, 4 }
  0x17   : > { %1966 = sst [smem:[#allocation21_spill]] %s1490_s28  ;;  %p81_p4 = por %p79_p1, %p54_p0 }
  0x18   : > { %s233_s30 = sand.u32 1, %s1490_s28   ;;  %s1596_s6 = sand.u32 1, %s1458_s20  }
  0x19   : > { %s1943_s7 = sshll.u32 %s1596_s6, 8  ;;  %s1111_s8 = sshll.u32 %s1482_s26, 4 }
  0x1a   : > { %s1967_s1 = sld [smem:[#allocation29_spill]]  ;;  %s237_s13 = scalar_lea.vmem [#allocation6], %s1943_s7 }
  0x1b   : > { %s245_s14 = sshll.u32 %s237_s13, 4  ;;  %p1607_p5 = pnand %p1945_p3, %p81_p4  ;;  %s246_s14 = int_to_ptr.vmem [resolvable:$true] %s245_s14 }
  0x1c   : > { %p1097_p6 = scmp.ge.s32.totalorder %s1490_s28, 1  ;;  %s1612_s16 = scalar_lea.sflag [#allocation7], %s233_s30 }
  0x1d   : > { %s1492_s17 = smov 512   ;;  %s1494_s9 = smov 16  }
  0x1e   : > { %p294_p7 = scmp.lt.s32.totalorder %s1490_s28, 5  ;;  %s1623_s30 = sadd.s32 4294967295, %s1490_s28  }
  0x1f   : > { %s36_s13 = sadd.s32 1, %s1482_s26  ;;  %s39_s7 = sadd.s32 1, %s1486_s27 }
  0x20   : > { %s242_s11 = scalar_lea.hbm %s1967_s1, %s1111_s8  ;;  %s1493_s8 = smov 256  }
  0x21   : > { %s243_s12 = sshll.u32 %s242_s11, 4  ;;  %p1618_p8 = pnand %p1097_p6, %p294_p7  ;;  %s244_s12 = int_to_ptr.hbm [resolvable:$true] %s243_s12 }
  0x22   : > { %1130 = dma.hbm_to_vmem [thread:$0]  (!%p1607_p5), %s244_s12, 4096, %s246_s14, %s1612_s16, %s1492_s17, %s1493_s8, %s1494_s9  }
  0x23   : > { %s1083_s11 = sadd.s32 4294967294, %s1490_s28   ;;  %p37_p9 = scmp.ge.s32.totalorder %s36_s13, 2 }
  0x24   : > { %s46_s12 = sadd.s32 1, %s1470_s23  ;;  %p53_p10 = scmp.ne.s32.totalorder %s1470_s23, %s1466_s22 }
  0x25   : > { %p59_p11 = scmp.ne.s32.totalorder %s1466_s22, %s1462_s21  ;;  %s2005_s13 = smov (%p37_p9, %s36_s13), 0 }
  0x26   : > { %1970 = sst [smem:[#allocation22_spill]] %s2005_s13  ;;  %s2007_s7 = smov (!%p37_p9, %s39_s7), %s1486_s27 }
  0x27   : > { %p1641_p12 = por %p54_p0, %p53_p10  ;;  %p60_p13 = scmp.eq.s32.totalorder %s1623_s30, 0 }
  0x28   : > { %p41_p1 = scmp.ge.s32.totalorder %s2007_s7, 2  ;;  %s69_s17 = ssub.s32 %s1482_s26, %s2005_s13 }
  0x29   : > { %p1651_p4 = por %p60_p13, %p59_p11  ;;  %p70_p6 = scmp.eq.s32.totalorder %s69_s17, 0 }
  0x2a   : > { %s2009_s7 = smov (%p41_p1, %s2007_s7), 0  ;;  %p1667_p0 = por %p85_p2, %p60_p13 }
  0x2b   : > { %1973 = sst [smem:[#allocation23_spill]] %s2009_s7  ;;  %s43_s1 = ssub.s32 %s1486_s27, %s2009_s7 }
  0x2c   : > { %s1660_s9 = scalar_select %p70_p6, %s1458_s20, %s72_s29  }
  0x2d   : > { %p44_p7 = scmp.eq.s32.totalorder %s43_s1, 0  ;;  %p182_p9 = scmp.eq.s32.totalorder %s1623_s30, 3 }
  0x2e   : > { %1974 = sst [smem:[#allocation24_spill]] %s1660_s9  ;;  %p188_p3 = scmp.eq.s32.totalorder %s1083_s11, 3 }
  0x2f   : > { %s211_s13 = sand.u32 1, %s1470_s23   ;;  %p1679_p1 = por %p182_p9, %p53_p10 }
  0x30   : > { %s1674_s17 = scalar_select %p44_p7, %s1470_s23, %s46_s12  }
  0x31   : > { %s1977_s25 = scalar_select %p1679_p1, 1, 0 }
  0x32   : > { %1976 = sst [smem:[#allocation25_spill]] %s1674_s17  ;;  %p1686_p2 = por %p188_p3, %p59_p11 }
  0x33   : > { %1978 = sst [smem:[#allocation26_spill]] %s1977_s25  ;;  %s1086_s29 = sshll.u32 %s211_s13, 7 }
  0x34   : > { %s1979_s18 = scalar_select %p1686_p2, 1, 0 }
  0x35   : > { %s1110_s7 = sshll.u32 %s1486_s27, 7  ;;  %s1981_s0 = sld [smem:[#allocation28_spill]] }
  0x36   : > { %1980 = sst [smem:[#allocation27_spill]] %s1979_s18  ;;  %s215_s20 = scalar_lea.vmem [#allocation3], %s1086_s29 }
  0x37   : > { %s223_s12 = sshll.u32 %s215_s20, 4  ;;  %p1982_p10 = scmp.lt.s32.totalorder %s1490_s28, 4  ;;  %s224_s12 = int_to_ptr.vmem [resolvable:$true] %s223_s12 }
  0x38   : > { %s1092_s23 = sshll.u32 %s1596_s6, 1  ;;  %s212_s18 = scalar_lea.sflag [#allocation4], %s211_s13 }
  0x39   : > { %p1125_p3 = pnand %p1982_p10, %p1641_p12  ;;  %s1495_s21 = smov 128  }
  0x3a   : > { %s1496_s27 = smov 8   ;;  %s1093_s9 = sshll.u32 %s1482_s26, 1 }
  0x3b   : > { %s220_s11 = scalar_lea.hbm %s1981_s0, %s1110_s7  ;;  %s263_s20 = scalar_lea.hbm %s1939_s2, %s1093_s9 }
  0x3c   : > { %s221_s17 = sshll.u32 %s220_s11, 4  ;;  %s259_s1 = scalar_lea.vmem [#allocation8], %s1092_s23  ;;  %s222_s17 = int_to_ptr.hbm [resolvable:$true] %s221_s17 }
  0x3d   : > { %1127 = dma.hbm_to_vmem [thread:$0]  (!%p1125_p3), %s222_s17, 2048, %s224_s12, %s212_s18, %s1495_s21, %s1495_s21, %s1496_s27  }
  0x3e   : > { %s267_s11 = sshll.u32 %s259_s1, 4  ;;  %s265_s0 = sshll.u32 %s263_s20, 4  ;;  %s268_s11 = int_to_ptr.vmem [resolvable:$true] %s267_s11  ;;  %s266_s0 = int_to_ptr.hbm [resolvable:$true] %s265_s0 }
  0x3f   : > { %1133 = dma.hbm_to_vmem [thread:$0]  (!%p1607_p5), %s266_s0, 32, %s268_s11, %s1612_s16  }
  0x40   : > { %s1112_s14 = sshll.u32 %s1482_s26, 8  ;;  %s1983_s17 = sshll.u32 %s1596_s6, 8 }
  0x41   : > { %s283_s25 = scalar_lea.hbm %s1940_s3, %s1112_s14  ;;  %s278_s18 = scalar_lea.vmem [#allocation9], %s1983_s17 }
  0x42   : > { %s286_s12 = sshll.u32 %s278_s18, 4  ;;  %s284_s4 = sshll.u32 %s283_s25, 4  ;;  %s287_s12 = int_to_ptr.vmem [resolvable:$true] %s286_s12  ;;  %s285_s4 = int_to_ptr.hbm [resolvable:$true] %s284_s4 }
  0x43   : > { %s275_s7 = scalar_lea.sflag [#allocation10], %s1596_s6  ;;  %298 = sbr.rel (%p1618_p8) target bundleno = 566 (0x236), region = 40 }
  0x44   : > { %1136 = dma.hbm_to_vmem [thread:$0]  (!%p1607_p5), %s285_s4, 4096, %s287_s12, %s275_s7, %s1495_s21, %s1495_s21, %s1496_s27  }
  0x45   : > { %s1718_s0 = sand.u32 (!%p1618_p8), 1, %s1466_s22  }
  0x46   : > { %s1098_s23 = sshll.u32 (!%p1618_p8), %s1718_s0, 7  ;;  %s301_s28 = scalar_lea.sflag (!%p1618_p8), [#allocation4], %s1718_s0 }
  0x47   : > { %s1722_s16 = scalar_lea.vmem (!%p1618_p8), [#allocation3], %s1098_s23 }
  0x48   : > { %1433 = dma.done.wait (%p1651_p4), %s301_s28, 2048  }
  0x49   : > { %1435 = vsyncadd (%p1651_p4), %s301_s28, 4294965248  ;;  %s310_s4 = sand.u32 1, %s1623_s30   ;;  %s312_s21 = sand.u32 1, %s1454_s19  }
  0x4a   : > { %s1099_s25 = sshll.u32 %s312_s21, 8  ;;  %s311_s27 = scalar_lea.sflag [#allocation7], %s310_s4 }
  0x4b   : > { %s1730_s6 = scalar_lea.vmem [#allocation6], %s1099_s25 }
  0x4c   : > { %1437 = dma.done.wait (%p1667_p0), %s311_s27, 4128  }
  0x4d   : > { %1439 = vsyncadd (%p1667_p0), %s311_s27, 4294963168  ;;  %s1100_s15 = sshll.u32 %s312_s21, 1  ;;  %s331_s8 = scalar_lea.sflag [#allocation10], %s312_s21 }
  0x4e   : > { %s1736_s10 = scalar_lea.vmem [#allocation8], %s1100_s15  ;;  %s1738_s9 = scalar_lea.vmem [#allocation9], %s1099_s25 }
  0x4f   : > { %1441 = dma.done.wait (%p1667_p0), %s331_s8, 4096  }
  0x50   : > { %1443 = vsyncadd (%p1667_p0), %s331_s8, 4294963200  ;;  %s1744_s30 = scalar_lea.vmem [#allocation11], %s1098_s23  ;;  %p1103_p5 = scmp.ne.s32.totalorder %s1474_s24, 0 }
  0x52   : > { %385 = sbr.rel (%p1103_p5) target bundleno = 104 (0x68), region = 60 }
  0x57   : > { %v1497_v0 = vmov 0.0  }
  0x58   : > { %386 = vst [vmem:[#allocation2 + $0x30] sm:$0xff] %v1497_v0 }
  0x59   : > { %387 = vst [vmem:[#allocation2] sm:$0xff] %v1497_v0 }
  0x5a   : > { %388 = vst [vmem:[#allocation2 + $0x58] sm:$0xff] %v1497_v0 }
  0x5b   : > { %389 = vst [vmem:[#allocation2 + $0x18] sm:$0xff] %v1497_v0 }
  0x5c   : > { %390 = vst [vmem:[#allocation2 + $0x50] sm:$0xff] %v1497_v0 }
  0x5d   : > { %391 = vst [vmem:[#allocation2 + $0x68] sm:$0xff] %v1497_v0 }
  0x5e   : > { %392 = vst [vmem:[#allocation2 + $0x8] sm:$0xff] %v1497_v0 }
  0x5f   : > { %393 = vst [vmem:[#allocation2 + $0x48] sm:$0xff] %v1497_v0 }
  0x60   : > { %394 = vst [vmem:[#allocation2 + $0x40] sm:$0xff] %v1497_v0 }
  0x61   : > { %395 = vst [vmem:[#allocation2 + $0x20] sm:$0xff] %v1497_v0 }
  0x62   : > { %396 = vst [vmem:[#allocation2 + $0x10] sm:$0xff] %v1497_v0 }
  0x63   : > { %397 = vst [vmem:[#allocation2 + $0x38] sm:$0xff] %v1497_v0 }
  0x64   : > { %398 = vst [vmem:[#allocation2 + $0x60] sm:$0xff] %v1497_v0 }
  0x65   : > { %399 = vst [vmem:[#allocation2 + $0x70] sm:$0xff] %v1497_v0 }
  0x66   : > { %400 = vst [vmem:[#allocation2 + $0x78] sm:$0xff] %v1497_v0 }
  0x67   : > { %401 = vst [vmem:[#allocation2 + $0x28] sm:$0xff] %v1497_v0 }
  0x68 PF: > { %v448_v1 = vld [vmem:[%s1730_s6 + $0xf0] sm:$0xff]  ;;  %v449_v2 = vld [vmem:[%s1730_s6 + $0xf8] sm:$0xff]  ;;  %v446_v3 = vld [vmem:[%s1730_s6 + $0xe0] sm:$0xff]  ;;  %p1104_p8 = scmp.ne.s32.totalorder %s1474_s24, 1 }
  0x69   : > { %456 = vmatpush.msra.mxu0 %v448_v1  ;;  %521 = vmatpush.msra.mxu1 %v449_v2  ;;  %v447_v4 = vld [vmem:[%s1730_s6 + $0xe8] sm:$0xff]  ;;  %v444_v5 = vld [vmem:[%s1730_s6 + $0xd0] sm:$0xff]  ;;  %v445_v6 = vld [vmem:[%s1730_s6 + $0xd8] sm:$0xff]  ;;  %s1984_s20 = sld [smem:[#allocation30_spill]] (!%p1104_p8) }
  0x6a   : > { %v442_v7 = vld [vmem:[%s1730_s6 + $0xc0] sm:$0xff]  ;;  %v443_v8 = vld [vmem:[%s1730_s6 + $0xc8] sm:$0xff]  ;;  %v440_v9 = vld [vmem:[%s1730_s6 + $0xb0] sm:$0xff] }
  0x6b   : > { %457 = vmatpush.msra.mxu0 %v446_v3  ;;  %522 = vmatpush.msra.mxu1 %v447_v4  ;;  %v441_v10 = vld [vmem:[%s1730_s6 + $0xb8] sm:$0xff]  ;;  %v438_v11 = vld [vmem:[%s1730_s6 + $0xa0] sm:$0xff]  ;;  %v439_v12 = vld [vmem:[%s1730_s6 + $0xa8] sm:$0xff] }
  0x6c   : > { %v436_v13 = vld [vmem:[%s1730_s6 + $0x90] sm:$0xff]  ;;  %v437_v14 = vld [vmem:[%s1730_s6 + $0x98] sm:$0xff]  ;;  %v434_v15 = vld [vmem:[%s1730_s6 + $0x80] sm:$0xff] }
  0x6d   : > { %458 = vmatpush.msra.mxu0 %v444_v5  ;;  %523 = vmatpush.msra.mxu1 %v445_v6  ;;  %v435_v16 = vld [vmem:[%s1730_s6 + $0x88] sm:$0xff]  ;;  %v432_v17 = vld [vmem:[%s1730_s6 + $0x70] sm:$0xff]  ;;  %v433_v18 = vld [vmem:[%s1730_s6 + $0x78] sm:$0xff] }
  0x6e   : > { %v430_v19 = vld [vmem:[%s1730_s6 + $0x60] sm:$0xff]  ;;  %v431_v20 = vld [vmem:[%s1730_s6 + $0x68] sm:$0xff]  ;;  %v428_v21 = vld [vmem:[%s1730_s6 + $0x50] sm:$0xff] }
  0x6f   : > { %459 = vmatpush.msra.mxu0 %v442_v7  ;;  %524 = vmatpush.msra.mxu1 %v443_v8  ;;  %v429_v22 = vld [vmem:[%s1730_s6 + $0x58] sm:$0xff]  ;;  %v426_v23 = vld [vmem:[%s1730_s6 + $0x40] sm:$0xff]  ;;  %v427_v24 = vld [vmem:[%s1730_s6 + $0x48] sm:$0xff] }
  0x70   : > { %v424_v25 = vld [vmem:[%s1730_s6 + $0x30] sm:$0xff]  ;;  %v425_v26 = vld [vmem:[%s1730_s6 + $0x38] sm:$0xff]  ;;  %v422_v27 = vld [vmem:[%s1730_s6 + $0x20] sm:$0xff] }
  0x71   : > { %460 = vmatpush.msra.mxu0 %v440_v9  ;;  %525 = vmatpush.msra.mxu1 %v441_v10  ;;  %v423_v28 = vld [vmem:[%s1730_s6 + $0x28] sm:$0xff]  ;;  %v420_v29 = vld [vmem:[%s1730_s6 + $0x10] sm:$0xff]  ;;  %v421_v30 = vld [vmem:[%s1730_s6 + $0x18] sm:$0xff] }
  0x72   : > { %v418_v31 = vld [vmem:[%s1730_s6] sm:$0xff]  ;;  %v419_v32 = vld [vmem:[%s1730_s6 + $0x8] sm:$0xff]  ;;  %v404_v35 = vld [vmem:[%s1722_s16 + $0x10] sm:$0xff] }
  0x73   : > { %461 = vmatpush.msra.mxu0 %v438_v11  ;;  %526 = vmatpush.msra.mxu1 %v439_v12  ;;  %v402_v33 = vld [vmem:[%s1722_s16] sm:$0xff]  ;;  %v403_v34 = vld [vmem:[%s1722_s16 + $0x8] sm:$0xff]  ;;  %v405_v36 = vld [vmem:[%s1722_s16 + $0x18] sm:$0xff] }
  0x74   : > { %v406_v37 = vld [vmem:[%s1722_s16 + $0x20] sm:$0xff]  ;;  %v407_v38 = vld [vmem:[%s1722_s16 + $0x28] sm:$0xff]  ;;  %v408_v39 = vld [vmem:[%s1722_s16 + $0x30] sm:$0xff] }
  0x75   : > { %462 = vmatpush.msra.mxu0 %v436_v13  ;;  %527 = vmatpush.msra.mxu1 %v437_v14  ;;  %v409_v40 = vld [vmem:[%s1722_s16 + $0x38] sm:$0xff]  ;;  %v410_v41 = vld [vmem:[%s1722_s16 + $0x40] sm:$0xff]  ;;  %v411_v46 = vld [vmem:[%s1722_s16 + $0x48] sm:$0xff] }
  0x76   : > { %v681_v42 = vld [vmem:[%s1738_s9 + $0x78] sm:$0xff]  ;;  %v680_v44 = vld [vmem:[%s1738_s9 + $0x70] sm:$0xff]  ;;  %v679_v47 = vld [vmem:[%s1738_s9 + $0x68] sm:$0xff] }
  0x77   : > { %463 = vmatpush.msra.mxu0 %v434_v15  ;;  %528 = vmatpush.msra.mxu1 %v435_v16  ;;  %v697_v43 = vld [vmem:[%s1738_s9 + $0xf8] sm:$0xff]  ;;  %v696_v45 = vld [vmem:[%s1738_s9 + $0xf0] sm:$0xff]  ;;  %v695_v48 = vld [vmem:[%s1738_s9 + $0xe8] sm:$0xff] }
  0x78   : > { %698 = vmatpush.msra.mxu2 %v681_v42  ;;  %763 = vmatpush.msra.mxu3 %v697_v43  ;;  %v678_v49 = vld [vmem:[%s1738_s9 + $0x60] sm:$0xff]  ;;  %v677_v51 = vld [vmem:[%s1738_s9 + $0x58] sm:$0xff]  ;;  %v676_v53 = vld [vmem:[%s1738_s9 + $0x50] sm:$0xff] }
  0x79   : > { %464 = vmatpush.msra.mxu0 %v432_v17  ;;  %529 = vmatpush.msra.mxu1 %v433_v18  ;;  %v694_v50 = vld [vmem:[%s1738_s9 + $0xe0] sm:$0xff]  ;;  %v693_v52 = vld [vmem:[%s1738_s9 + $0xd8] sm:$0xff]  ;;  %v692_v54 = vld [vmem:[%s1738_s9 + $0xd0] sm:$0xff] }
  0x7a   : > { %699 = vmatpush.msra.mxu2 %v680_v44  ;;  %764 = vmatpush.msra.mxu3 %v696_v45  ;;  %v412_v55 = vld [vmem:[%s1722_s16 + $0x50] sm:$0xff]  ;;  %v674_v58 = vld [vmem:[%s1738_s9 + $0x40] sm:$0xff]  ;;  %v673_v60 = vld [vmem:[%s1738_s9 + $0x38] sm:$0xff] }
  0x7b   : > { %465 = vmatpush.msra.mxu0 %v430_v19  ;;  %530 = vmatpush.msra.mxu1 %v431_v20  ;;  %v675_v56 = vld [vmem:[%s1738_s9 + $0x48] sm:$0xff]  ;;  %v690_v59 = vld [vmem:[%s1738_s9 + $0xc0] sm:$0xff]  ;;  %v689_v61 = vld [vmem:[%s1738_s9 + $0xb8] sm:$0xff] }
  0x7c   : > { %700 = vmatpush.msra.mxu2 %v679_v47  ;;  %765 = vmatpush.msra.mxu3 %v695_v48  ;;  %v691_v57 = vld [vmem:[%s1738_s9 + $0xc8] sm:$0xff]  ;;  %v672_v62 = vld [vmem:[%s1738_s9 + $0x30] sm:$0xff]  ;;  %v670_v3 = vld [vmem:[%s1738_s9 + $0x20] sm:$0xff] }
  0x7d   : > { %466 = vmatpush.msra.mxu0 %v428_v21  ;;  %531 = vmatpush.msra.mxu1 %v429_v22  ;;  %v688_v63 = vld [vmem:[%s1738_s9 + $0xb0] sm:$0xff]  ;;  %v671_v1 = vld [vmem:[%s1738_s9 + $0x28] sm:$0xff]  ;;  %v686_v4 = vld [vmem:[%s1738_s9 + $0xa0] sm:$0xff] }
  0x7e   : > { %701 = vmatpush.msra.mxu2 %v678_v49  ;;  %766 = vmatpush.msra.mxu3 %v694_v50  ;;  %v413_v0 = vld [vmem:[%s1722_s16 + $0x58] sm:$0xff]  ;;  %v687_v2 = vld [vmem:[%s1738_s9 + $0xa8] sm:$0xff]  ;;  %v414_v7 = vld [vmem:[%s1722_s16 + $0x60] sm:$0xff] }
  0x7f   : > { %467 = vmatpush.msra.mxu0 %v426_v23  ;;  %532 = vmatpush.msra.mxu1 %v427_v24  ;;  %v669_v5 = vld [vmem:[%s1738_s9 + $0x18] sm:$0xff]  ;;  %v668_v8 = vld [vmem:[%s1738_s9 + $0x10] sm:$0xff]  ;;  %v667_v10 = vld [vmem:[%s1738_s9 + $0x8] sm:$0xff] }
  0x80   : > { %702 = vmatpush.msra.mxu2 %v677_v51  ;;  %767 = vmatpush.msra.mxu3 %v693_v52  ;;  %v685_v6 = vld [vmem:[%s1738_s9 + $0x98] sm:$0xff]  ;;  %v684_v9 = vld [vmem:[%s1738_s9 + $0x90] sm:$0xff]  ;;  %v683_v11 = vld [vmem:[%s1738_s9 + $0x88] sm:$0xff] }
  0x81   : > { %468 = vmatpush.msra.mxu0 %v424_v25  ;;  %533 = vmatpush.msra.mxu1 %v425_v26  ;;  %v666_v12 = vld [vmem:[%s1738_s9] sm:$0xff]  ;;  %v416_v15 = vld [vmem:[%s1722_s16 + $0x70] sm:$0xff]  ;;  %v417_v16 = vld [vmem:[%s1722_s16 + $0x78] sm:$0xff] }
  0x82   : > { %703 = vmatpush.msra.mxu2 %v676_v53  ;;  %768 = vmatpush.msra.mxu3 %v692_v54  ;;  %v682_v13 = vld [vmem:[%s1738_s9 + $0x80] sm:$0xff]  ;;  %v450_v17 = vld [vmem:[%s1736_s10] sm:$0x3] }
  0x83   : > { %469 = vmatpush.msra.mxu0 %v422_v27  ;;  %534 = vmatpush.msra.mxu1 %v423_v28  ;;  %v415_v14 = vld [vmem:[%s1722_s16 + $0x68] sm:$0xff]  ;;  %v1828_v18 = vperm.slane %v450_v17, 0  ;;  %v1830_v19 = vperm.slane %v450_v17, 1 }
  0x84   : > { %704 = vmatpush.msra.mxu2 %v675_v56  ;;  %769 = vmatpush.msra.mxu3 %v691_v57 }
  0x85   : > { %470 = vmatpush.msra.mxu0 %v420_v29  ;;  %535 = vmatpush.msra.mxu1 %v421_v30 }
  0x86   : > { %705 = vmatpush.msra.mxu2 %v674_v58  ;;  %770 = vmatpush.msra.mxu3 %v690_v59 }
  0x87   : > { %471 = vmatpush.msra.mxu0 %v418_v31  ;;  %536 = vmatpush.msra.mxu1 %v419_v32 }
  0x88   : > { %472 = vmatmul.f32.vlgmr.msra.gmra.mxu0 %v402_v33  ;;  %537 = vmatmul.f32.vlgmr.msra.gmra.mxu1 %v402_v33 }
  0x89   : > { %706 = vmatpush.msra.mxu2 %v673_v60  ;;  %771 = vmatpush.msra.mxu3 %v689_v61 }
  0x8b   : > { %707 = vmatpush.msra.mxu2 %v672_v62  ;;  %772 = vmatpush.msra.mxu3 %v688_v63 }
  0x8d   : > { %708 = vmatpush.msra.mxu2 %v671_v1  ;;  %773 = vmatpush.msra.mxu3 %v687_v2 }
  0x8f   : > { %709 = vmatpush.msra.mxu2 %v670_v3  ;;  %774 = vmatpush.msra.mxu3 %v686_v4 }
  0x90   : > { %475 = vmatmul.f32.gmra.mxu0 %v403_v34  ;;  %540 = vmatmul.f32.gmra.mxu1 %v403_v34 }
  0x91   : > { %710 = vmatpush.msra.mxu2 %v669_v5  ;;  %775 = vmatpush.msra.mxu3 %v685_v6 }
  0x93   : > { %711 = vmatpush.msra.mxu2 %v668_v8  ;;  %776 = vmatpush.msra.mxu3 %v684_v9 }
  0x95   : > { %712 = vmatpush.msra.mxu2 %v667_v10  ;;  %777 = vmatpush.msra.mxu3 %v683_v11 }
  0x97   : > { %713 = vmatpush.msra.mxu2 %v666_v12  ;;  %778 = vmatpush.msra.mxu3 %v682_v13 }
  0x98   : > { %478 = vmatmul.f32.gmra.mxu0 %v404_v35  ;;  %543 = vmatmul.f32.gmra.mxu1 %v404_v35 }
  0xa0   : > { %481 = vmatmul.f32.gmra.mxu0 %v405_v36  ;;  %546 = vmatmul.f32.gmra.mxu1 %v405_v36 }
  0xa8   : > { %484 = vmatmul.f32.gmra.mxu0 %v406_v37  ;;  %549 = vmatmul.f32.gmra.mxu1 %v406_v37 }
  0xb0   : > { %487 = vmatmul.f32.gmra.mxu0 %v407_v38  ;;  %552 = vmatmul.f32.gmra.mxu1 %v407_v38 }
  0xb8   : > { %490 = vmatmul.f32.gmra.mxu0 %v408_v39  ;;  %555 = vmatmul.f32.gmra.mxu1 %v408_v39 }
  0xc0   : > { %493 = vmatmul.f32.gmra.mxu0 %v409_v40  ;;  %558 = vmatmul.f32.gmra.mxu1 %v409_v40 }
  0xc8   : > { %496 = vmatmul.f32.gmra.mxu0 %v410_v41  ;;  %561 = vmatmul.f32.gmra.mxu1 %v410_v41 }
  0xd0   : > { %499 = vmatmul.f32.gmra.mxu0 %v411_v46  ;;  %564 = vmatmul.f32.gmra.mxu1 %v411_v46 }
  0xd8   : > { %502 = vmatmul.f32.gmra.mxu0 %v412_v55  ;;  %567 = vmatmul.f32.gmra.mxu1 %v412_v55 }
  0xe0   : > { %505 = vmatmul.f32.gmra.mxu0 %v413_v0  ;;  %570 = vmatmul.f32.gmra.mxu1 %v413_v0 }
  0xe8   : > { %508 = vmatmul.f32.gmra.mxu0 %v414_v7  ;;  %573 = vmatmul.f32.gmra.mxu1 %v414_v7 }
  0xf0   : > { %511 = vmatmul.f32.gmra.mxu0 %v415_v14  ;;  %576 = vmatmul.f32.gmra.mxu1 %v415_v14 }
  0xf8   : > { %514 = vmatmul.f32.gmra.mxu0 %v416_v15  ;;  %579 = vmatmul.f32.gmra.mxu1 %v416_v15 }
 0x100   : > { %517 = vmatmul.f32.gmra.mxu0 %v417_v16  ;;  %582 = vmatmul.f32.gmra.mxu1 %v417_v16 }
 0x105   : > { %v473_v20 = vpop.f32.mrf.mxu0  ;;  %v538_v21 = vpop.f32.mrf.mxu1 }
 0x106   : > { %v474_v22 = vadd.f32 %v473_v20, %v1828_v18  ;;  %v539_v23 = vadd.f32 %v538_v21, %v1830_v19 }
 0x108   : > { %v586_v24 = vmul.f32 0.01, %v474_v22  ;;  %v587_v25 = vmul.f32 0.01, %v539_v23 }
 0x10a   : > { %v618_v26 = vmax.f32 %v474_v22, %v586_v24  ;;  %v619_v27 = vmax.f32 %v539_v23, %v587_v25 }
 0x10c   : > { %714 = vmatmul.f32.vlgmr.msra.gmra.mxu2 %v618_v26  ;;  %779 = vmatmul.f32.vlgmr.msra.gmra.mxu3 %v619_v27 }
 0x10d   : > { %v476_v28 = vpop.f32.mrf.mxu0  ;;  %v541_v29 = vpop.f32.mrf.mxu1 }
 0x10e   : > { %v477_v30 = vadd.f32 %v476_v28, %v1828_v18  ;;  %v542_v31 = vadd.f32 %v541_v29, %v1830_v19 }
 0x110   : > { %v588_v32 = vmul.f32 0.01, %v477_v30  ;;  %v589_v33 = vmul.f32 0.01, %v542_v31 }
 0x112   : > { %v620_v34 = vmax.f32 %v477_v30, %v588_v32  ;;  %v621_v35 = vmax.f32 %v542_v31, %v589_v33 }
 0x114   : > { %717 = vmatmul.f32.gmra.mxu2 %v620_v34  ;;  %782 = vmatmul.f32.gmra.mxu3 %v621_v35 }
 0x115   : > { %v479_v36 = vpop.f32.mrf.mxu0  ;;  %v544_v37 = vpop.f32.mrf.mxu1 }
 0x116   : > { %v480_v38 = vadd.f32 %v479_v36, %v1828_v18  ;;  %v545_v39 = vadd.f32 %v544_v37, %v1830_v19 }
 0x118   : > { %v590_v40 = vmul.f32 0.01, %v480_v38  ;;  %v591_v41 = vmul.f32 0.01, %v545_v39 }
 0x11a   : > { %v622_v42 = vmax.f32 %v480_v38, %v590_v40  ;;  %v623_v43 = vmax.f32 %v545_v39, %v591_v41 }
 0x11c   : > { %720 = vmatmul.f32.gmra.mxu2 %v622_v42  ;;  %785 = vmatmul.f32.gmra.mxu3 %v623_v43 }
 0x11d   : > { %v482_v44 = vpop.f32.mrf.mxu0  ;;  %v547_v45 = vpop.f32.mrf.mxu1 }
 0x11e   : > { %v483_v46 = vadd.f32 %v482_v44, %v1828_v18  ;;  %v548_v47 = vadd.f32 %v547_v45, %v1830_v19 }
 0x120   : > { %v592_v48 = vmul.f32 0.01, %v483_v46  ;;  %v593_v49 = vmul.f32 0.01, %v548_v47 }
 0x122   : > { %v624_v50 = vmax.f32 %v483_v46, %v592_v48  ;;  %v625_v51 = vmax.f32 %v548_v47, %v593_v49 }
 0x124   : > { %723 = vmatmul.f32.gmra.mxu2 %v624_v50  ;;  %788 = vmatmul.f32.gmra.mxu3 %v625_v51 }
 0x125   : > { %v485_v52 = vpop.f32.mrf.mxu0  ;;  %v550_v53 = vpop.f32.mrf.mxu1 }
 0x126   : > { %v486_v54 = vadd.f32 %v485_v52, %v1828_v18  ;;  %v551_v55 = vadd.f32 %v550_v53, %v1830_v19 }
 0x128   : > { %v594_v56 = vmul.f32 0.01, %v486_v54  ;;  %v595_v57 = vmul.f32 0.01, %v551_v55 }
 0x12a   : > { %v626_v58 = vmax.f32 %v486_v54, %v594_v56  ;;  %v627_v59 = vmax.f32 %v551_v55, %v595_v57 }
 0x12c   : > { %726 = vmatmul.f32.gmra.mxu2 %v626_v58  ;;  %791 = vmatmul.f32.gmra.mxu3 %v627_v59 }
 0x12d   : > { %v488_v60 = vpop.f32.mrf.mxu0  ;;  %v553_v61 = vpop.f32.mrf.mxu1 }
 0x12e   : > { %v489_v62 = vadd.f32 %v488_v60, %v1828_v18  ;;  %v554_v63 = vadd.f32 %v553_v61, %v1830_v19 }
 0x130   : > { %v596_v0 = vmul.f32 0.01, %v489_v62  ;;  %v597_v1 = vmul.f32 0.01, %v554_v63 }
 0x132   : > { %v628_v2 = vmax.f32 %v489_v62, %v596_v0  ;;  %v629_v3 = vmax.f32 %v554_v63, %v597_v1 }
 0x134   : > { %729 = vmatmul.f32.gmra.mxu2 %v628_v2  ;;  %794 = vmatmul.f32.gmra.mxu3 %v629_v3 }
 0x135   : > { %v491_v4 = vpop.f32.mrf.mxu0  ;;  %v556_v5 = vpop.f32.mrf.mxu1 }
 0x136   : > { %v492_v6 = vadd.f32 %v491_v4, %v1828_v18  ;;  %v557_v7 = vadd.f32 %v556_v5, %v1830_v19 }
 0x138   : > { %v598_v8 = vmul.f32 0.01, %v492_v6  ;;  %v599_v9 = vmul.f32 0.01, %v557_v7 }
 0x13a   : > { %v630_v10 = vmax.f32 %v492_v6, %v598_v8  ;;  %v631_v11 = vmax.f32 %v557_v7, %v599_v9 }
 0x13c   : > { %732 = vmatmul.f32.gmra.mxu2 %v630_v10  ;;  %797 = vmatmul.f32.gmra.mxu3 %v631_v11 }
 0x13d   : > { %v494_v12 = vpop.f32.mrf.mxu0  ;;  %v559_v13 = vpop.f32.mrf.mxu1 }
 0x13e   : > { %v495_v14 = vadd.f32 %v494_v12, %v1828_v18  ;;  %v560_v15 = vadd.f32 %v559_v13, %v1830_v19 }
 0x140   : > { %v600_v16 = vmul.f32 0.01, %v495_v14  ;;  %v601_v17 = vmul.f32 0.01, %v560_v15 }
 0x142   : > { %v632_v20 = vmax.f32 %v495_v14, %v600_v16  ;;  %v633_v21 = vmax.f32 %v560_v15, %v601_v17 }
 0x144   : > { %735 = vmatmul.f32.gmra.mxu2 %v632_v20  ;;  %800 = vmatmul.f32.gmra.mxu3 %v633_v21 }
 0x145   : > { %v497_v22 = vpop.f32.mrf.mxu0  ;;  %v562_v23 = vpop.f32.mrf.mxu1 }
 0x146   : > { %v498_v24 = vadd.f32 %v497_v22, %v1828_v18  ;;  %v563_v25 = vadd.f32 %v562_v23, %v1830_v19 }
 0x148   : > { %v602_v26 = vmul.f32 0.01, %v498_v24  ;;  %v603_v27 = vmul.f32 0.01, %v563_v25 }
 0x14a   : > { %v634_v28 = vmax.f32 %v498_v24, %v602_v26  ;;  %v635_v29 = vmax.f32 %v563_v25, %v603_v27  ;;  %v650_v25 = vld [vmem:[#allocation2 + $0x30] sm:$0xff] }
 0x14c   : > { %738 = vmatmul.f32.gmra.mxu2 %v634_v28  ;;  %803 = vmatmul.f32.gmra.mxu3 %v635_v29 }
 0x14d   : > { %v500_v30 = vpop.f32.mrf.mxu0  ;;  %v565_v31 = vpop.f32.mrf.mxu1 }
 0x14e   : > { %v501_v32 = vadd.f32 %v500_v30, %v1828_v18  ;;  %v566_v33 = vadd.f32 %v565_v31, %v1830_v19  ;;  %v651_v30 = vld [vmem:[#allocation2] sm:$0xff] }
 0x150   : > { %v604_v34 = vmul.f32 0.01, %v501_v32  ;;  %v605_v35 = vmul.f32 0.01, %v566_v33 }
 0x152   : > { %v636_v36 = vmax.f32 %v501_v32, %v604_v34  ;;  %v637_v37 = vmax.f32 %v566_v33, %v605_v35 }
 0x154   : > { %741 = vmatmul.f32.gmra.mxu2 %v636_v36  ;;  %806 = vmatmul.f32.gmra.mxu3 %v637_v37 }
 0x155   : > { %v503_v38 = vpop.f32.mrf.mxu0  ;;  %v568_v39 = vpop.f32.mrf.mxu1 }
 0x156   : > { %v504_v40 = vadd.f32 %v503_v38, %v1828_v18  ;;  %v569_v41 = vadd.f32 %v568_v39, %v1830_v19  ;;  %v653_v38 = vld [vmem:[#allocation2 + $0x18] sm:$0xff] }
 0x158   : > { %v606_v42 = vmul.f32 0.01, %v504_v40  ;;  %v607_v43 = vmul.f32 0.01, %v569_v41 }
 0x15a   : > { %v638_v44 = vmax.f32 %v504_v40, %v606_v42  ;;  %v639_v45 = vmax.f32 %v569_v41, %v607_v43  ;;  %v654_v43 = vld [vmem:[#allocation2 + $0x50] sm:$0xff] }
 0x15c   : > { %744 = vmatmul.f32.gmra.mxu2 %v638_v44  ;;  %809 = vmatmul.f32.gmra.mxu3 %v639_v45 }
 0x15d   : > { %v506_v46 = vpop.f32.mrf.mxu0  ;;  %v571_v47 = vpop.f32.mrf.mxu1 }
 0x15e   : > { %v507_v48 = vadd.f32 %v506_v46, %v1828_v18  ;;  %v572_v49 = vadd.f32 %v571_v47, %v1830_v19 }
 0x160   : > { %v608_v50 = vmul.f32 0.01, %v507_v48  ;;  %v609_v51 = vmul.f32 0.01, %v572_v49 }
 0x162   : > { %v640_v52 = vmax.f32 %v507_v48, %v608_v50  ;;  %v641_v53 = vmax.f32 %v572_v49, %v609_v51  ;;  %v655_v48 = vld [vmem:[#allocation2 + $0x68] sm:$0xff] }
 0x164   : > { %747 = vmatmul.f32.gmra.mxu2 %v640_v52  ;;  %812 = vmatmul.f32.gmra.mxu3 %v641_v53  ;;  %v656_v53 = vld [vmem:[#allocation2 + $0x8] sm:$0xff] }
 0x165   : > { %v509_v54 = vpop.f32.mrf.mxu0  ;;  %v574_v55 = vpop.f32.mrf.mxu1 }
 0x166   : > { %v510_v56 = vadd.f32 %v509_v54, %v1828_v18  ;;  %v575_v57 = vadd.f32 %v574_v55, %v1830_v19 }
 0x168   : > { %v610_v58 = vmul.f32 0.01, %v510_v56  ;;  %v611_v59 = vmul.f32 0.01, %v575_v57 }
 0x16a   : > { %v642_v60 = vmax.f32 %v510_v56, %v610_v58  ;;  %v643_v61 = vmax.f32 %v575_v57, %v611_v59  ;;  %v657_v58 = vld [vmem:[#allocation2 + $0x48] sm:$0xff] }
 0x16c   : > { %750 = vmatmul.f32.gmra.mxu2 %v642_v60  ;;  %815 = vmatmul.f32.gmra.mxu3 %v643_v61 }
 0x16d   : > { %v512_v62 = vpop.f32.mrf.mxu0  ;;  %v577_v63 = vpop.f32.mrf.mxu1 }
 0x16e   : > { %v513_v0 = vadd.f32 %v512_v62, %v1828_v18  ;;  %v578_v1 = vadd.f32 %v577_v63, %v1830_v19  ;;  %v658_v63 = vld [vmem:[#allocation2 + $0x40] sm:$0xff] }
 0x170   : > { %v612_v2 = vmul.f32 0.01, %v513_v0  ;;  %v613_v3 = vmul.f32 0.01, %v578_v1 }
 0x172   : > { %v644_v4 = vmax.f32 %v513_v0, %v612_v2  ;;  %v645_v5 = vmax.f32 %v578_v1, %v613_v3 }
 0x174   : > { %753 = vmatmul.f32.gmra.mxu2 %v644_v4  ;;  %818 = vmatmul.f32.gmra.mxu3 %v645_v5  ;;  %v659_v4 = vld [vmem:[#allocation2 + $0x20] sm:$0xff] }
 0x175   : > { %v515_v6 = vpop.f32.mrf.mxu0  ;;  %v580_v7 = vpop.f32.mrf.mxu1 }
 0x176   : > { %v516_v8 = vadd.f32 %v515_v6, %v1828_v18  ;;  %v581_v9 = vadd.f32 %v580_v7, %v1830_v19 }
 0x178   : > { %v614_v10 = vmul.f32 0.01, %v516_v8  ;;  %v615_v11 = vmul.f32 0.01, %v581_v9 }
 0x17a   : > { %v646_v12 = vmax.f32 %v516_v8, %v614_v10  ;;  %v647_v13 = vmax.f32 %v581_v9, %v615_v11  ;;  %v660_v9 = vld [vmem:[#allocation2 + $0x10] sm:$0xff] }
 0x17c   : > { %756 = vmatmul.f32.gmra.mxu2 %v646_v12  ;;  %821 = vmatmul.f32.gmra.mxu3 %v647_v13 }
 0x17d   : > { %v518_v14 = vpop.f32.mrf.mxu0  ;;  %v583_v15 = vpop.f32.mrf.mxu1 }
 0x17e   : > { %v519_v16 = vadd.f32 %v518_v14, %v1828_v18  ;;  %v584_v17 = vadd.f32 %v583_v15, %v1830_v19  ;;  %v652_v19 = vld [vmem:[#allocation2 + $0x58] sm:$0xff] }
 0x17f   : > { %v661_v14 = vld [vmem:[#allocation2 + $0x38] sm:$0xff] }
 0x180   : > { %v616_v20 = vmul.f32 0.01, %v519_v16  ;;  %v617_v21 = vmul.f32 0.01, %v584_v17 }
 0x182   : > { %v648_v22 = vmax.f32 %v519_v16, %v616_v20  ;;  %v649_v23 = vmax.f32 %v584_v17, %v617_v21  ;;  %v662_v21 = vld [vmem:[#allocation2 + $0x60] sm:$0xff] }
 0x184   : > { %759 = vmatmul.f32.gmra.mxu2 %v648_v22  ;;  %824 = vmatmul.f32.gmra.mxu3 %v649_v23 }
 0x18f   : > { %v715_v24 = vpop.f32.mrf.mxu2  ;;  %v780_v26 = vpop.f32.mrf.mxu3 }
 0x190   : > { %v781_v27 = vadd.f32 %v780_v26, %v715_v24  ;;  %v663_v26 = vld [vmem:[#allocation2 + $0x70] sm:$0xff] }
 0x192   : > { %v828_v28 = vadd.f32 %v781_v27, %v650_v25 }
 0x194   : > { %844 = vst [vmem:[#allocation2 + $0x30] sm:$0xff] %v828_v28 }
 0x197   : > { %v718_v29 = vpop.f32.mrf.mxu2  ;;  %v783_v31 = vpop.f32.mrf.mxu3 }
 0x198   : > { %v784_v32 = vadd.f32 %v783_v31, %v718_v29  ;;  %v664_v31 = vld [vmem:[#allocation2 + $0x78] sm:$0xff] }
 0x19a   : > { %v829_v33 = vadd.f32 %v784_v32, %v651_v30 }
 0x19c   : > { %845 = vst [vmem:[#allocation2] sm:$0xff] %v829_v33 }
 0x19f   : > { %v721_v18 = vpop.f32.mrf.mxu2  ;;  %v786_v34 = vpop.f32.mrf.mxu3 }
 0x1a0   : > { %v787_v35 = vadd.f32 %v786_v34, %v721_v18  ;;  %v665_v34 = vld [vmem:[#allocation2 + $0x28] sm:$0xff] }
 0x1a2   : > { %v830_v36 = vadd.f32 %v787_v35, %v652_v19 }
 0x1a4   : > { %846 = vst [vmem:[#allocation2 + $0x58] sm:$0xff] %v830_v36 }
 0x1a7   : > { %v724_v37 = vpop.f32.mrf.mxu2  ;;  %v789_v39 = vpop.f32.mrf.mxu3 }
 0x1a8   : > { %v790_v40 = vadd.f32 %v789_v39, %v724_v37 }
 0x1aa   : > { %v831_v41 = vadd.f32 %v790_v40, %v653_v38 }
 0x1ac   : > { %847 = vst [vmem:[#allocation2 + $0x18] sm:$0xff] %v831_v41 }
 0x1af   : > { %v727_v42 = vpop.f32.mrf.mxu2  ;;  %v792_v44 = vpop.f32.mrf.mxu3 }
 0x1b0   : > { %v793_v45 = vadd.f32 %v792_v44, %v727_v42 }
 0x1b2   : > { %v832_v46 = vadd.f32 %v793_v45, %v654_v43 }
 0x1b4   : > { %848 = vst [vmem:[#allocation2 + $0x50] sm:$0xff] %v832_v46 }
 0x1b7   : > { %v730_v47 = vpop.f32.mrf.mxu2  ;;  %v795_v49 = vpop.f32.mrf.mxu3 }
 0x1b8   : > { %v796_v50 = vadd.f32 %v795_v49, %v730_v47 }
 0x1ba   : > { %v833_v51 = vadd.f32 %v796_v50, %v655_v48 }
 0x1bc   : > { %849 = vst [vmem:[#allocation2 + $0x68] sm:$0xff] %v833_v51 }
 0x1bf   : > { %v733_v52 = vpop.f32.mrf.mxu2  ;;  %v798_v54 = vpop.f32.mrf.mxu3 }
 0x1c0   : > { %v799_v55 = vadd.f32 %v798_v54, %v733_v52 }
 0x1c2   : > { %v834_v56 = vadd.f32 %v799_v55, %v656_v53 }
 0x1c4   : > { %850 = vst [vmem:[#allocation2 + $0x8] sm:$0xff] %v834_v56 }
 0x1c7   : > { %v736_v57 = vpop.f32.mrf.mxu2  ;;  %v801_v59 = vpop.f32.mrf.mxu3 }
 0x1c8   : > { %v802_v60 = vadd.f32 %v801_v59, %v736_v57 }
 0x1ca   : > { %v835_v61 = vadd.f32 %v802_v60, %v657_v58 }
 0x1cc   : > { %851 = vst [vmem:[#allocation2 + $0x48] sm:$0xff] %v835_v61 }
 0x1cf   : > { %v739_v62 = vpop.f32.mrf.mxu2  ;;  %v804_v0 = vpop.f32.mrf.mxu3 }
 0x1d0   : > { %v805_v1 = vadd.f32 %v804_v0, %v739_v62 }
 0x1d2   : > { %v836_v2 = vadd.f32 %v805_v1, %v658_v63 }
 0x1d4   : > { %852 = vst [vmem:[#allocation2 + $0x40] sm:$0xff] %v836_v2 }
 0x1d7   : > { %v742_v3 = vpop.f32.mrf.mxu2  ;;  %v807_v5 = vpop.f32.mrf.mxu3 }
 0x1d8   : > { %v808_v6 = vadd.f32 %v807_v5, %v742_v3 }
 0x1da   : > { %v837_v7 = vadd.f32 %v808_v6, %v659_v4 }
 0x1dc   : > { %853 = vst [vmem:[#allocation2 + $0x20] sm:$0xff] %v837_v7 }
 0x1df   : > { %v745_v8 = vpop.f32.mrf.mxu2  ;;  %v810_v10 = vpop.f32.mrf.mxu3 }
 0x1e0   : > { %v811_v11 = vadd.f32 %v810_v10, %v745_v8 }
 0x1e2   : > { %v838_v12 = vadd.f32 %v811_v11, %v660_v9 }
 0x1e4   : > { %854 = vst [vmem:[#allocation2 + $0x10] sm:$0xff] %v838_v12 }
 0x1e7   : > { %v748_v13 = vpop.f32.mrf.mxu2  ;;  %v813_v15 = vpop.f32.mrf.mxu3 }
 0x1e8   : > { %v814_v16 = vadd.f32 %v813_v15, %v748_v13 }
 0x1ea   : > { %v839_v17 = vadd.f32 %v814_v16, %v661_v14 }
 0x1ec   : > { %855 = vst [vmem:[#allocation2 + $0x38] sm:$0xff] %v839_v17 }
 0x1ef   : > { %v751_v20 = vpop.f32.mrf.mxu2  ;;  %v816_v22 = vpop.f32.mrf.mxu3 }
 0x1f0   : > { %v817_v23 = vadd.f32 %v816_v22, %v751_v20 }
 0x1f2   : > { %v840_v24 = vadd.f32 %v817_v23, %v662_v21 }
 0x1f4   : > { %856 = vst [vmem:[#allocation2 + $0x60] sm:$0xff] %v840_v24 }
 0x1f7   : > { %v754_v25 = vpop.f32.mrf.mxu2  ;;  %v819_v27 = vpop.f32.mrf.mxu3 }
 0x1f8   : > { %v820_v28 = vadd.f32 %v819_v27, %v754_v25 }
 0x1fa   : > { %v841_v29 = vadd.f32 %v820_v28, %v663_v26 }
 0x1fc   : > { %857 = vst [vmem:[#allocation2 + $0x70] sm:$0xff] %v841_v29 }
 0x1ff   : > { %v757_v30 = vpop.f32.mrf.mxu2  ;;  %v822_v32 = vpop.f32.mrf.mxu3 }
 0x200   : > { %v823_v33 = vadd.f32 %v822_v32, %v757_v30 }
 0x202   : > { %v842_v18 = vadd.f32 %v823_v33, %v664_v31 }
 0x204   : > { %858 = vst [vmem:[#allocation2 + $0x78] sm:$0xff] %v842_v18 }
 0x207   : > { %v760_v19 = vpop.f32.mrf.mxu2  ;;  %v825_v35 = vpop.f32.mrf.mxu3 }
 0x208   : > { %v826_v36 = vadd.f32 %v825_v35, %v760_v19  ;;  %863 = sbr.rel (%p1104_p8) target bundleno = 544 (0x220), region = 64 }
 0x20a   : > { %v843_v37 = vadd.f32 %v826_v36, %v665_v34 }
 0x20c   : > { %859 = vst [vmem:[#allocation2 + $0x28] sm:$0xff] %v843_v37 }
 0x20d   : > { %v864_v38 = vld [vmem:[#allocation2 + $0x30] sm:$0xff]  ;;  %v1239_v39 = vld [vmem:[%s1984_s20] ss:$0 sm:$0xff]  ;;  %v866_v41 = vld [vmem:[#allocation2 + $0x58] sm:$0xff] }
 0x20e   : > { %v865_v40 = vld [vmem:[#allocation2] sm:$0xff]  ;;  %v867_v42 = vld [vmem:[#allocation2 + $0x18] sm:$0xff]  ;;  %v884_v43 = vadd.f32 %v1239_v39, %v864_v38  ;;  %v886_v45 = vadd.f32 %v1239_v39, %v866_v41  ;;  %v868_v46 = vld [vmem:[#allocation2 + $0x50] sm:$0xff] }
 0x20f   : > { %v885_v44 = vadd.f32 %v1239_v39, %v865_v40  ;;  %v869_v47 = vld [vmem:[#allocation2 + $0x68] sm:$0xff]  ;;  %v887_v48 = vadd.f32 %v1239_v39, %v867_v42  ;;  %v888_v50 = vadd.f32 %v1239_v39, %v868_v46  ;;  %v872_v53 = vld [vmem:[#allocation2 + $0x40] sm:$0xff]  ;;  %v874_v57 = vld [vmem:[#allocation2 + $0x10] sm:$0xff] }
 0x210   : > { %v870_v49 = vld [vmem:[#allocation2 + $0x8] sm:$0xff]  ;;  %900 = vst [vmem:[%s1744_s30] sm:$0xff] %v884_v43  ;;  %v889_v52 = vadd.f32 %v1239_v39, %v869_v47  ;;  %v873_v55 = vld [vmem:[#allocation2 + $0x20] sm:$0xff]  ;;  %v892_v58 = vadd.f32 %v1239_v39, %v872_v53  ;;  %v875_v59 = vld [vmem:[#allocation2 + $0x38] sm:$0xff]  ;;  %v894_v62 = vadd.f32 %v1239_v39, %v874_v57 }
 0x211   : > { %v871_v51 = vld [vmem:[#allocation2 + $0x48] sm:$0xff]  ;;  %901 = vst [vmem:[%s1744_s30 + $0x8] sm:$0xff] %v885_v44  ;;  %v890_v54 = vadd.f32 %v1239_v39, %v870_v49  ;;  %v893_v60 = vadd.f32 %v1239_v39, %v873_v55  ;;  %v876_v61 = vld [vmem:[#allocation2 + $0x60] sm:$0xff]  ;;  %v877_v63 = vld [vmem:[#allocation2 + $0x70] sm:$0xff]  ;;  %v895_v0 = vadd.f32 %v1239_v39, %v875_v59 }
 0x212   : > { %902 = vst [vmem:[%s1744_s30 + $0x10] sm:$0xff] %v886_v45  ;;  %v891_v56 = vadd.f32 %v1239_v39, %v871_v51  ;;  %v878_v1 = vld [vmem:[#allocation2 + $0x78] sm:$0xff]  ;;  %v896_v2 = vadd.f32 %v1239_v39, %v876_v61  ;;  %v897_v4 = vadd.f32 %v1239_v39, %v877_v63 }
 0x213   : > { %903 = vst [vmem:[%s1744_s30 + $0x18] sm:$0xff] %v887_v48  ;;  %v879_v3 = vld [vmem:[#allocation2 + $0x28] sm:$0xff]  ;;  %v898_v5 = vadd.f32 %v1239_v39, %v878_v1 }
 0x214   : > { %904 = vst [vmem:[%s1744_s30 + $0x20] sm:$0xff] %v888_v50  ;;  %v899_v6 = vadd.f32 %v1239_v39, %v879_v3 }
 0x215   : > { %905 = vst [vmem:[%s1744_s30 + $0x28] sm:$0xff] %v889_v52 }
 0x216   : > { %906 = vst [vmem:[%s1744_s30 + $0x30] sm:$0xff] %v890_v54 }
 0x217   : > { %907 = vst [vmem:[%s1744_s30 + $0x38] sm:$0xff] %v891_v56 }
 0x218   : > { %908 = vst [vmem:[%s1744_s30 + $0x40] sm:$0xff] %v892_v58 }
 0x219   : > { %909 = vst [vmem:[%s1744_s30 + $0x48] sm:$0xff] %v893_v60 }
 0x21a   : > { %910 = vst [vmem:[%s1744_s30 + $0x50] sm:$0xff] %v894_v62 }
 0x21b   : > { %911 = vst [vmem:[%s1744_s30 + $0x58] sm:$0xff] %v895_v0 }
 0x21c   : > { %912 = vst [vmem:[%s1744_s30 + $0x60] sm:$0xff] %v896_v2 }
 0x21d   : > { %913 = vst [vmem:[%s1744_s30 + $0x68] sm:$0xff] %v897_v4 }
 0x21e   : > { %914 = vst [vmem:[%s1744_s30 + $0x70] sm:$0xff] %v898_v5 }
 0x21f   : > { %915 = vst [vmem:[%s1744_s30 + $0x78] sm:$0xff] %v899_v6 }
 0x220 PF: > { %s1985_s24 = sld [smem:[#allocation19_spill]]  ;;  %s929_s12 = sshll.u32 %s1744_s30, 4  ;;  %s930_s12 = int_to_ptr.vmem [resolvable:$true] %s929_s12 }
 0x221   : > { %s1987_s17 = sld [smem:[#allocation31_spill]]  ;;  %s917_s23 = scalar_lea.sflag [#allocation5], %s1718_s0 }
 0x226   : > { %s1113_s11 = sshll.u32 %s1985_s24, 7 }
 0x227   : > { %s928_s18 = scalar_lea.hbm %s1987_s17, %s1113_s11  ;;  %s1380_s25 = scalar_lea.hbm %s1987_s17, 256 }
 0x228   : > { %s931_s7 = sshll.u32 %s928_s18, 4  ;;  %s932_s7 = int_to_ptr.hbm [resolvable:$true] %s931_s7 }
 0x229   : > { %s1374_s28 = sshra.s32 %s932_s7, 4  ;;  %s1375_s28 = int_to_ptr.hbm [resolvable:$true] %s1374_s28 }
 0x22a   : > { %s1376_s16 = scalar_lea.hbm %s1375_s28, 128  ;;  %p1381_p4 = scmp.lt.s32.totalorder %s1375_s28, %s1987_s17 }
 0x22b   : > { %p1377_p11 = scmp.ne.s32.totalorder %s1375_s28, %s1376_s16  ;;  %p1382_p6 = scmp.lt.s32.totalorder %s1380_s25, %s1376_s16 }
 0x22d   : > { %p1378_p12 = pnand %p1377_p11, %p1679_p1  ;;  %p1383_p0 = por %p1382_p6, %p1381_p4 }
 0x22f   : > { %p1379_p13 = pneg %p1378_p12 }
 0x231   : > { %p1384_p7 = pnand %p1383_p0, %p1379_p13 }
 0x233   : > { %1387 = shalt.err (!%p1384_p7)
}
 0x234   : > { %s1498_s0 = smov 128   ;;  %s1499_s15 = smov 8  }
 0x235   : > { %1122 = dma.vmem_to_hbm [thread:$0]  (%p1679_p1), %s930_s12, 2048, %s932_s7, %s917_s23, %s1498_s0, %s1498_s0, %s1499_s15  }
 0x236 PF: > { %s1988_s10 = sld [smem:[#allocation21_spill]] }
 0x237   : > { %s1989_s8 = sld [smem:[#allocation17_spill]] }
 0x23c   : > { %p1142_p9 = scmp.ge.s32.totalorder %s1988_s10, 2 }
 0x23d   : > { %s946_s30 = sand.u32 1, %s1989_s8  }
 0x23e   : > { %p1138_p10 = pnand %p1142_p9, %p1686_p2  ;;  %s947_s5 = scalar_lea.sflag [#allocation5], %s946_s30 }
 0x240   : > { %p1139_p3 = pneg %p1138_p10 }
 0x242   : > { %1445 = dma.done.wait (%p1139_p3), %s947_s5, 2048  }
 0x243   : > { %1447 = vsyncadd (%p1139_p3), %s947_s5, 4294965248  ;;  %s27_s28 = sadd.s32 1, %s1988_s10   ;;  %s1991_s29 = sld [smem:[#allocation16_spill]] }
 0x244   : > { %p24_p5 = scmp.ge.s32.totalorder %s27_s28, 6   ;;  %s1992_s20 = sld [smem:[#allocation24_spill]] }
 0x245   : > { %s1993_s24 = sld [smem:[#allocation18_spill]]  ;;  %s1998_s18 = smov %s1454_s19 }
 0x246   : > { %s1994_s23 = sld [smem:[#allocation25_spill]]  ;;  %s2000_s21 = smov %s1466_s22 }
 0x247   : > { %s1995_s25 = sld [smem:[#allocation20_spill]] }
 0x248   : > { %s1996_s1 = sld [smem:[#allocation22_spill]] }
 0x249   : > { %s1997_s27 = sld [smem:[#allocation23_spill]]  ;;  %s1999_s19 = smov %s1991_s29 }
 0x24a   :  { %26 = sbr.rel (!%p24_p5) target bundleno = 18 (0x12), region = 130 }
 0x24b   : > { %s2001_s22 = smov %s1993_s24  ;;  %s2002_s24 = smov %s1482_s26 }
 0x24e   : > { %s2003_s26 = smov %s1996_s1 }
 0x24f   :  { %953 = vsyncpa [#allocation4], 1 }
 0x250   :  { %955 = vsyncpa [#allocation4 + $0x1], 1 }
 0x251   :  { %956 = vsyncpa [#allocation7], 1 }
 0x252   :  { %958 = vsyncpa [#allocation7 + $0x1], 1 }
 0x253   :  { %959 = vsyncpa [#allocation10], 1 }
 0x254   :  { %961 = vsyncpa [#allocation10 + $0x1], 1 }
 0x255   :  { %962 = vsyncpa [#allocation5], 1 }
 0x256   :  { %964 = vsyncpa [#allocation5 + $0x1], 1 }

</bundles_post_ra>
